<compile_context>
chip_gen: v6e
topology: v6e:2x2x1
jax: 0.10.0
libtpu: 0.0.40
codegen_flags: <defaults>
</compile_context>

<pallas_src>
import math

import jax
import jax.numpy as jnp
from jax.experimental import pallas as pl
from jax.experimental.pallas import tpu as pltpu


def _round_up(x: int, m: int) -> int:
    return ((x + m - 1) // m) * m


def _gather_rows(emb: jnp.ndarray, idx: jnp.ndarray) -> jnp.ndarray:
    """emb[idx] as a Pallas one-hot MXU gather.

    emb: (n_tokens, emb_size)
    idx: (t_out,) int32
    returns (t_out, emb_size)
    """
    n_tokens, emb_size = emb.shape
    t_out = int(idx.shape[0])

    # Lane/sublane-dense tiles, capped so VMEM stays small even for big tables.
    TILE_T = min(256, _round_up(t_out, 8))
    TILE_N = min(512, _round_up(n_tokens, 128))
    TILE_E = min(512, _round_up(emb_size, 128))

    t_pad = _round_up(t_out, TILE_T)
    n_pad = _round_up(n_tokens, TILE_N)
    e_pad = _round_up(emb_size, TILE_E)

    emb_p = emb
    if (n_pad, e_pad) != (n_tokens, emb_size):
        emb_p = jnp.pad(emb, ((0, n_pad - n_tokens), (0, e_pad - emb_size)))

    # Clip to valid range (PyTorch would raise on OOB; the one-hot gather is
    # memory-safe regardless, this just keeps semantics well-defined).
    idx_c = jnp.clip(idx.astype(jnp.int32), 0, n_tokens - 1)
    # Padded rows get index n_pad -> one-hot all zero -> zero rows, sliced off.
    idx_p = jnp.full((t_pad, 1), n_pad, dtype=jnp.int32).at[:t_out, 0].set(idx_c)

    grid = (t_pad // TILE_T, e_pad // TILE_E, n_pad // TILE_N)

    def kernel(idx_ref, emb_ref, out_ref):
        n_i = pl.program_id(2)

        @pl.when(n_i == 0)
        def _():
            out_ref[...] = jnp.zeros_like(out_ref)

        # Tile-local indices; rows whose index is not in this token tile
        # produce an all-zero one-hot row (contribute nothing).
        local = idx_ref[...] - n_i * TILE_N                       # (TILE_T, 1)
        iota = jax.lax.broadcasted_iota(jnp.int32, (TILE_T, TILE_N), 1)
        onehot = (iota == local).astype(emb_ref.dtype)            # (TILE_T, TILE_N)
        out_ref[...] += jnp.dot(
            onehot, emb_ref[...],
            preferred_element_type=jnp.float32).astype(out_ref.dtype)

    itemsize = jnp.dtype(emb.dtype).itemsize
    cost = pl.CostEstimate(
        flops=2 * t_pad * n_pad * e_pad,
        transcendentals=0,
        bytes_accessed=(grid[0] * n_pad * e_pad * itemsize   # table reads
                        + t_pad * 4                          # indices
                        + t_pad * e_pad * itemsize))         # output writes

    out = pl.pallas_call(
        kernel,
        out_shape=jax.ShapeDtypeStruct((t_pad, e_pad), emb.dtype),
        grid=grid,
        in_specs=[
            pl.BlockSpec((TILE_T, 1), lambda t, e, n: (t, 0)),
            pl.BlockSpec((TILE_N, TILE_E), lambda t, e, n: (n, e)),
        ],
        out_specs=pl.BlockSpec((TILE_T, TILE_E), lambda t, e, n: (t, e)),
        compiler_params=pltpu.CompilerParams(
            dimension_semantics=("parallel", "parallel", "arbitrary")),
        cost_estimate=cost,
    )(idx_p, emb_p)

    return out[:t_out, :emb_size]


def static_graph_embedding_forward(emb, expand=None, token_index=None,
                                    tokens_first=True):
    """JAX/Pallas equivalent of StaticGraphEmbedding.forward."""
    emb = jnp.asarray(emb)

    if token_index is None:
        # Identity fast path: no kernel launch, no HBM round-trip.
        gathered = emb
    else:
        # TODO(synk): only 1-D token_index (standard row gather) is supported;
        # multi-dim fancy indexing is not translated.
        idx = jnp.asarray(token_index, dtype=jnp.int32).reshape(-1)
        gathered = _gather_rows(emb, idx)            # Pallas one-hot MXU gather

    if not tokens_first:
        gathered = gathered.T

    if expand is None:
        return gathered

    # Reproduce PyTorch view/expand shape arithmetic (pure Python on ints).
    shape = list(gathered.shape)
    view = [1 if d > 0 else shape.pop(0 if tokens_first else -1) for d in expand]
    target = [int(expand[i]) if expand[i] > 0 else int(view[i])
              for i in range(len(expand))]
    # PyTorch .expand() is a stride-0 view; broadcast_to is the value-level JAX
    # equivalent and XLA fuses the replication into consumers (no extra gather).
    return jnp.broadcast_to(gathered.reshape(view), target)


if __name__ == "__main__":
    # Deterministic parameter init, matching tsl's inits.uniform(emb_size, emb):
    # U(-1/sqrt(emb_size), 1/sqrt(emb_size)).
    key = jax.random.PRNGKey(0)
    n_tokens, emb_size = 16, 32
    bound = 1.0 / math.sqrt(emb_size)
    emb = jax.random.uniform(key, (n_tokens, emb_size), jnp.float32,
                             minval=-bound, maxval=bound)

    token_index = jnp.array([3, 0, 7, 5, 11, 2, 9, 14], dtype=jnp.int32)
    batch = 2
    t_out = int(token_index.shape[0])

    # 1) Main path: gather (Pallas kernel) + expand to (batch, t_out, emb_size).
    out = static_graph_embedding_forward(
        emb, expand=[batch, -1, -1], token_index=token_index, tokens_first=True)
    out = jax.block_until_ready(out)
    ref = jnp.broadcast_to(emb[token_index][None], (batch, t_out, emb_size))
    assert out.shape == (batch, t_out, emb_size), out.shape
    assert jnp.allclose(out, ref), "mismatch vs reference (gather+expand)"

    # 2) Gather with tokens_first=False (kernel + transpose glue).
    out_t = jax.block_until_ready(static_graph_embedding_forward(
        emb, token_index=token_index, tokens_first=False))
    assert out_t.shape == (emb_size, t_out)
    assert jnp.allclose(out_t, emb[token_index].T), "mismatch (gather, transposed)"

    # 3) Identity fast path: full table, no kernel launch.
    out_id = jax.block_until_ready(static_graph_embedding_forward(emb))
    assert out_id.shape == (n_tokens, emb_size)
    assert jnp.allclose(out_id, emb), "mismatch vs reference (identity)"

    # 4) expand without gather: broadcast of the full table, no kernel launch.
    out_b = jax.block_until_ready(static_graph_embedding_forward(
        emb, expand=[batch, -1, -1]))
    assert out_b.shape == (batch, n_tokens, emb_size)
    assert jnp.allclose(out_b, jnp.broadcast_to(emb[None],
                                                (batch, n_tokens, emb_size)))

    print("KERNEL_OK")
</pallas_src>

<mosaic_0001>
module attributes {stable_mosaic.version = 11 : i64} {
  func.func @kernel(%arg0: i32, %arg1: i32, %arg2: i32, %arg3: memref<8x1xi32, #tpu.memory_space<vmem>>, %arg4: memref<128x128xf32, #tpu.memory_space<vmem>>, %arg5: memref<8x128xf32, #tpu.memory_space<vmem>>) attributes {dimension_semantics = [#tpu.dimension_semantics<parallel>, #tpu.dimension_semantics<parallel>, #tpu.dimension_semantics<arbitrary>], iteration_bounds = array<i64: 1, 1, 1>, scalar_prefetch = 0 : i64, scratch_operands = 0 : i64, tpu.core_type = #tpu.core_type<tc>, window_params = [{transform_indices = @transform_0, window_bounds = array<i64: 8, 1>}, {transform_indices = @transform_1, window_bounds = array<i64: 128, 128>}, {transform_indices = @transform_2, window_bounds = array<i64: 8, 128>}]} {
    %c0_i32 = arith.constant 0 : i32
    %0 = arith.cmpi eq, %arg2, %c0_i32 : i32
    %1 = arith.extui %0 : i1 to i32
    %c0_i32_0 = arith.constant 0 : i32
    %2 = arith.cmpi ne, %1, %c0_i32_0 : i32
    scf.if %2 {
      %cst_8 = arith.constant 0.000000e+00 : f32
      %17 = vector.broadcast %cst_8 : f32 to vector<8x128xf32>
      %c0_9 = arith.constant 0 : index
      %c0_10 = arith.constant 0 : index
      %18 = vector.load %arg5[%c0_9, %c0_10] : memref<8x128xf32, #tpu.memory_space<vmem>>, vector<8x128xf32>
      tpu.vector_store %arg5[%c0_9, %c0_10], %17 {strides = array<i32>} : memref<8x128xf32, #tpu.memory_space<vmem>>, vector<8x128xf32>,
    } else {
    }
    %c0 = arith.constant 0 : index
    %c0_1 = arith.constant 0 : index
    %3 = vector.load %arg3[%c0, %c0_1] : memref<8x1xi32, #tpu.memory_space<vmem>>, vector<8x1xi32>
    %c128_i32 = arith.constant 128 : i32
    %4 = arith.muli %arg2, %c128_i32 : i32
    %5 = vector.broadcast %4 : i32 to vector<8x1xi32>
    %6 = arith.subi %3, %5 : vector<8x1xi32>
    %7 = tpu.iota {dimensions = array<i32: 1>} : vector<8x128xi32>
    %8 = vector.broadcast %6 : vector<8x1xi32> to vector<8x128xi32>
    %9 = arith.cmpi eq, %7, %8 : vector<8x128xi32>
    %10 = arith.extui %9 : vector<8x128xi1> to vector<8x128xi32>
    %11 = arith.sitofp %10 : vector<8x128xi32> to vector<8x128xf32>
    %c0_2 = arith.constant 0 : index
    %c0_3 = arith.constant 0 : index
    %12 = vector.load %arg5[%c0_2, %c0_3] : memref<8x128xf32, #tpu.memory_space<vmem>>, vector<8x128xf32>
    %c0_4 = arith.constant 0 : index
    %c0_5 = arith.constant 0 : index
    %13 = vector.load %arg4[%c0_4, %c0_5] : memref<128x128xf32, #tpu.memory_space<vmem>>, vector<128x128xf32>
    %cst = arith.constant dense<0.000000e+00> : vector<8x128xf32>
    %14 = tpu.matmul %11, %13, %cst {dimension_numbers = #tpu.dot_dimension_numbers<[1], [0], [0], [1], [0, 0, 1, 1], [], []>} : vector<8x128xf32>, vector<128x128xf32>, vector<8x128xf32> -> vector<8x128xf32>
    %15 = arith.addf %12, %14 : vector<8x128xf32>
    %c0_6 = arith.constant 0 : index
    %c0_7 = arith.constant 0 : index
    %16 = vector.load %arg5[%c0_6, %c0_7] : memref<8x128xf32, #tpu.memory_space<vmem>>, vector<8x128xf32>
    tpu.vector_store %arg5[%c0_6, %c0_7], %15 {strides = array<i32>} : memref<8x128xf32, #tpu.memory_space<vmem>>, vector<8x128xf32>,
    return
  }
  func.func @transform_0(%arg0: i32, %arg1: i32, %arg2: i32) -> (i32, i32) {
    %c0_i32 = arith.constant 0 : i32
    %c0_i32_0 = arith.constant 0 : i32
    return %arg0, %c0_i32 : i32, i32
  }
  func.func @transform_1(%arg0: i32, %arg1: i32, %arg2: i32) -> (i32, i32) {
    %c0_i32 = arith.constant 0 : i32
    return %arg2, %arg1 : i32, i32
  }
  func.func @transform_2(%arg0: i32, %arg1: i32, %arg2: i32) -> (i32, i32) {
    %c0_i32 = arith.constant 0 : i32
    return %arg0, %arg1 : i32, i32
  }
}

</mosaic_0001>

<bundles_post_ra>
// kernel: tpu_custom_call.1
= control target key start
LH: loop header
LB: loop body
LE: loop exit
PB: predicated region body
PF: predicated region fallthrough
CT: control target
= control target key end

     0   :  { %7 = vsyncpa [#allocation3], 0  ;;  %s286_s0 = inlined_call_operand.vmem [shape: s32[8,1], index: 0, kind: input, shape index: {}]   ;;  %s287_s1 = inlined_call_operand.hbm [shape: f32[128,128], index: 1, kind: input, shape index: {}]   ;;  %s288_s2 = inlined_call_operand.hbm [shape: f32[8,128], index: 2, kind: output, shape index: {}]  }
   0x1   :  { %8 = vsyncpa [#allocation4], 0  ;;  %s254_s9 = smov [#allocation2]  }
   0x2   :  { %s16_s10 = sshll.u32 %s254_s9, 4  ;;  %s17_s10 = int_to_ptr.vmem [resolvable:$true] %s16_s10 }
   0x3   :  { %s218_s11 = scalar_lea.vmem %s17_s10, 2048  ;;  %p223_p1 = scmp.lt.s32.totalorder %s17_s10, %s17_s10 }
   0x4   :  { %p219_p0 = scmp.ne.s32.totalorder %s17_s10, %s218_s11  ;;  %p224_p2 = scmp.lt.s32.totalorder %s218_s11, %s218_s11 }
   0x6   :  { %p225_p3 = por %p224_p2, %p223_p1 }
   0x8   :  { %p226_p4 = pnand %p225_p3, %p219_p0 }
   0xa   :  { %229 = shalt.err (!%p226_p4)
}
   0xb   :  { %s255_s12 = smov 128   ;;  %s256_s13 = smov 8  }
   0xc   :  { %22 = dma.hbm_to_vmem [thread:$0]  %s287_s1, 2048, %s17_s10, [#allocation3], %s255_s12, %s255_s12, %s256_s13  }
   0xd   :  { %250 = dma.done.wait [#allocation3], 2048  }
   0xe   :  { %251 = vsyncadd [#allocation3], 4294965248  ;;  %v257_v0 = vmov 0   ;;  %v258_v1 = vmov 0.0   ;;  %vm259_vm0 = vmmov 0   ;;  %v31_v2 = vld [vmem:[%s286_s0] sm:$0xff]  ;;  %v35_v19 = vlaneseq }
   0xf   :  { %209 = vset.pattern.permute.xlu0 %v257_v0  ;;  %166 = vmatprep.subr.mxu0 %v258_v1  ;;  %v59_v3 = vld [vmem:[#allocation2 + $0x78] sm:$0xff]  ;;  %v58_v4 = vld [vmem:[#allocation2 + $0x70] sm:$0xff]  ;;  %v57_v5 = vld [vmem:[#allocation2 + $0x68] sm:$0xff]  ;;  %v260_v22 = vmov 1.0   ;;  %s261_s0 = smov [#allocation5]  }
  0x10   :  { %198 = vmatprep.mubr.msk.f32.mxu0 %vm259_vm0, %v258_v1  ;;  %38 = vperm.xlu0 %209, %v31_v2   ;;  %v56_v6 = vld [vmem:[#allocation2 + $0x60] sm:$0xff]  ;;  %v55_v7 = vld [vmem:[#allocation2 + $0x58] sm:$0xff]  ;;  %v54_v8 = vld [vmem:[#allocation2 + $0x50] sm:$0xff]  ;;  %v36_v20 = vand.u32 127, %v35_v19  ;;  %s138_s1 = sshll.u32 %s261_s0, 4  ;;  %s139_s1 = int_to_ptr.vmem [resolvable:$true] %s138_s1 }
  0x11   :  { %167 = vmatpush3.msra.mxu0 %v59_v3  ;;  %v53_v9 = vld [vmem:[#allocation2 + $0x48] sm:$0xff]  ;;  %v52_v10 = vld [vmem:[#allocation2 + $0x40] sm:$0xff]  ;;  %v51_v11 = vld [vmem:[#allocation2 + $0x38] sm:$0xff]  ;;  %s230_s18 = scalar_lea.vmem %s139_s1, 128  ;;  %p235_p6 = scmp.lt.s32.totalorder %s139_s1, %s139_s1 }
  0x12   :  { %168 = vmatprep.subr.mxu0 %v258_v1  ;;  %v50_v12 = vld [vmem:[#allocation2 + $0x30] sm:$0xff]  ;;  %v49_v13 = vld [vmem:[#allocation2 + $0x28] sm:$0xff]  ;;  %v48_v14 = vld [vmem:[#allocation2 + $0x20] sm:$0xff]  ;;  %p231_p5 = scmp.ne.s32.totalorder %s139_s1, %s230_s18  ;;  %p236_p7 = scmp.lt.s32.totalorder %s230_s18, %s230_s18 }
  0x13   :  { %169 = vmatpush3.msra.mxu0 %v58_v4  ;;  %v47_v15 = vld [vmem:[#allocation2 + $0x18] sm:$0xff]  ;;  %v46_v16 = vld [vmem:[#allocation2 + $0x10] sm:$0xff]  ;;  %v45_v17 = vld [vmem:[#allocation2 + $0x8] sm:$0xff] }
  0x14   :  { %170 = vmatprep.subr.mxu0 %v258_v1  ;;  %v44_v18 = vld [vmem:[#allocation2] sm:$0xff]  ;;  %p237_p8 = por %p236_p7, %p235_p6 }
  0x15   :  { %171 = vmatpush3.msra.mxu0 %v57_v5 }
  0x16   :  { %172 = vmatprep.subr.mxu0 %v258_v1  ;;  %p238_p9 = pnand %p237_p8, %p231_p5 }
  0x17   :  { %173 = vmatpush3.msra.mxu0 %v56_v6 }
  0x18   :  { %174 = vmatprep.subr.mxu0 %v258_v1 }
  0x19   :  { %175 = vmatpush3.msra.mxu0 %v55_v7 }
  0x1a   :  { %176 = vmatprep.subr.mxu0 %v258_v1 }
  0x1b   :  { %177 = vmatpush3.msra.mxu0 %v54_v8 }
  0x1c   :  { %178 = vmatprep.subr.mxu0 %v258_v1 }
  0x1d   :  { %179 = vmatpush3.msra.mxu0 %v53_v9 }
  0x1e   :  { %180 = vmatprep.subr.mxu0 %v258_v1 }
  0x1f   :  { %181 = vmatpush3.msra.mxu0 %v52_v10 }
  0x20   :  { %182 = vmatprep.subr.mxu0 %v258_v1 }
  0x21   :  { %183 = vmatpush3.msra.mxu0 %v51_v11 }
  0x22   :  { %184 = vmatprep.subr.mxu0 %v258_v1 }
  0x23   :  { %185 = vmatpush3.msra.mxu0 %v50_v12 }
  0x24   :  { %186 = vmatprep.subr.mxu0 %v258_v1 }
  0x25   :  { %187 = vmatpush3.msra.mxu0 %v49_v13 }
  0x26   :  { %188 = vmatprep.subr.mxu0 %v258_v1 }
  0x27   :  { %189 = vmatpush3.msra.mxu0 %v48_v14 }
  0x28   :  { %190 = vmatprep.subr.mxu0 %v258_v1 }
  0x29   :  { %191 = vmatpush3.msra.mxu0 %v47_v15 }
  0x2a   :  { %192 = vmatprep.subr.mxu0 %v258_v1 }
  0x2b   :  { %193 = vmatpush3.msra.mxu0 %v46_v16 }
  0x2c   :  { %194 = vmatprep.subr.mxu0 %v258_v1 }
  0x2d   :  { %195 = vmatpush3.msra.mxu0 %v45_v17 }
  0x2e   :  { %196 = vmatprep.subr.mxu0 %v258_v1 }
  0x2f   :  { %197 = vmatpush3.msra.mxu0 %v44_v18 }
  0x8b   :  { %v39_v21 = vpop.permute.xlu0 %38 }
  0x8c   :  { %vm40_vm1 = vcmp.eq.s32.totalorder %v36_v20, %v39_v21 }
  0x8d   :  { %199 = vmatmul.mubr.msk.f32.vlgmr.msra.gmra.mxu0 %vm40_vm1, %v260_v22 }
 0x14d   :  { %v126_v23 = vpop.f32.mrf.mxu0 }
 0x14e   :  { %131 = vst [vmem:[#allocation5] sm:$0xff] %v126_v23 }
 0x14f   :  { %v200_v24 = vpop.f32.mrf.mxu0 }
 0x150   :  { %241 = shalt.err (!%p238_p9)
}
 0x151   :  { %141 = dma.vmem_to_hbm [thread:$0]  %s139_s1, 128, %s288_s2, [#allocation4]  }
 0x152   :  { %252 = dma.done.wait [#allocation4], 128  }
 0x153   :  { %253 = vsyncadd [#allocation4], 4294967168 }
 0x154   :  { %145 = vsyncpa [#allocation3], 1 }
 0x155   :  { %146 = vsyncpa [#allocation4], 1 }

</bundles_post_ra>
